<compile_context>
chip_gen: v7x
topology: tpu7x:2x2x1
jax: 0.10.0
libtpu: 0.0.40
codegen_flags: <defaults>
</compile_context>

<pallas_src>
import functools

import jax
import jax.numpy as jnp
import numpy as np
from jax import lax
from jax.experimental import pallas as pl
from jax.experimental.pallas import tpu as pltpu


# --------------------------------------------------------------------------
# Pallas kernel factory: whole (batch-fused, lane-packed) block per grid step.
# --------------------------------------------------------------------------
def _make_mbconv_kernel(*, k, stride, H, W, cmid, expand, use_skip):
    p = (k - 1) // 2

    def kernel(*refs):
        it = iter(refs)
        x_ref = next(it)                       # (N*H, W*Cin)
        if expand:
            w_exp_ref = next(it)               # (W*Cin, W*Cmid) block-diag
            b_exp_ref = next(it)               # (1, W*Cmid)
        w_dw_ref = next(it)                    # (k*k, W*Cmid) col-masked taps
        b_dw_ref = next(it)                    # (1, W*Cmid)
        w_proj_ref = next(it)                  # (W*Cmid, Wout*Cout)
        b_proj_ref = next(it)                  # (1, Wout*Cout)
        o_ref = next(it)                       # (N*Hout, Wout*Cout)
        dw_scr = next(it) if stride > 1 else None

        R = x_ref.shape[0]                     # N * H (fused batch/height rows)
        Lmid = W * cmid                        # packed lane width, mid stage

        x = x_ref[...]

        # ---- 1x1 expand conv (+bias) + ReLU6: lane-packed block-diag matmul
        if expand:
            xm = jnp.dot(x, w_exp_ref[...], preferred_element_type=jnp.float32)
            xm = xm + b_exp_ref[...]
            xm = jnp.minimum(jnp.maximum(xm, 0.0), 6.0)
        else:
            xm = x                             # Cmid == Cin

        # ---- depthwise kxk conv (+bias) + ReLU6 ----------------------------
        # Tap (dh, dw): output lane w*Cmid+m at row r reads
        # xm[r+dh, (w+dw)*Cmid+m] if inside the image, else 0 ("same" pad).
        # Rolls are circular; rows outside the image are zeroed by the row
        # mask (this also stops cross-image bleed on the fused N*H axis) and
        # columns outside the image are zeroed via the pre-masked tap weights.
        r_iota = lax.broadcasted_iota(jnp.int32, (R, 1), 0)
        h_in = r_iota % H                      # row index inside its image
        wdl = w_dw_ref[...]                    # (k*k, W*Cmid)
        acc = jnp.zeros((R, Lmid), jnp.float32)
        for kh in range(k):
            dh = kh - p
            if dh == 0:
                xr = xm
            else:
                rmask = ((h_in + dh >= 0) &
                         (h_in + dh < H)).astype(jnp.float32)
                xr = pltpu.roll(xm, (-dh) % R, axis=0) * rmask
            for kw in range(k):
                dw = kw - p
                xc = pltpu.roll(xr, (-dw * cmid) % Lmid, axis=1) if dw else xr
                t = kh * k + kw
                acc = acc + xc * wdl[t:t + 1, :]
        acc = acc + b_dw_ref[...]
        acc = jnp.minimum(jnp.maximum(acc, 0.0), 6.0)

        # ---- stride > 1: pick every stride-th output row via a strided read
        if stride > 1:
            dw_scr[...] = acc
            acc = dw_scr[pl.ds(0, o_ref.shape[0], stride=stride), :]

        # ---- 1x1 project conv (+bias); block weights also fold the stride-s
        # column subsample.  Optional identity skip (same packed layout).
        y = jnp.dot(acc, w_proj_ref[...], preferred_element_type=jnp.float32)
        y = y + b_proj_ref[...]
        if use_skip:
            y = y + x
        o_ref[...] = y

    return kernel


# --------------------------------------------------------------------------
# Wrapper (NCHW in / NCHW out, matching the PyTorch module).
# --------------------------------------------------------------------------
@functools.partial(jax.jit, static_argnames=("k", "stride", "expand_ratio"))
def mbconv_block(x_nchw, params, *, k, stride, expand_ratio):
    assert k % 2 == 1, "only odd depthwise kernels (k in {3,5}) are supported"
    f32 = jnp.float32
    x = jnp.transpose(x_nchw, (0, 2, 3, 1)).astype(f32)      # NHWC
    N, H, W, Cin = x.shape
    w_dw = params["w_dw"].astype(f32)                        # (k, k, Cmid)
    Cmid = w_dw.shape[2]
    w_proj = params["w_proj"].astype(f32)                    # (Cmid, Cout)
    Cout = w_proj.shape[1]
    expand = expand_ratio != 1
    if expand:
        assert params["w_exp"].shape == (Cin, Cmid)
    else:
        assert Cmid == Cin, "expand_ratio==1 requires depthwise chans == Cin"
    pad = (k - 1) // 2
    Hout = (H + 2 * pad - k) // stride + 1
    Wout = (W + 2 * pad - k) // stride + 1
    if stride > 1:
        assert H % stride == 0 and W % stride == 0
        assert Hout == H // stride and Wout == W // stride
    use_skip = (stride == 1) and (Cin == Cout)

    # ---- lane-packed operands (built wrapper/XLA side) ---------------------
    x_p = x.reshape(N * H, W * Cin)

    ins = [x_p]
    in_specs = [pl.BlockSpec((N * H, W * Cin), lambda i: (i, 0))]
    if expand:
        # block-diagonal 1x1 weight so the matmul runs directly in the
        # (rows, W*C) packed layout (no in-kernel relayout).
        w_exp_bd = jnp.kron(jnp.eye(W, dtype=f32), params["w_exp"].astype(f32))
        b_exp_l = jnp.tile(params["b_exp"].reshape(1, Cmid).astype(f32), (1, W))
        ins += [w_exp_bd, b_exp_l]
        in_specs += [pl.BlockSpec(w_exp_bd.shape, lambda i: (0, 0)),
                     pl.BlockSpec(b_exp_l.shape, lambda i: (0, 0))]

    # depthwise tap weights, lane-tiled over w with the column mask folded in
    w_idx = jnp.arange(W)
    taps = []
    for kh in range(k):
        for kw in range(k):
            dwo = kw - pad
            colmask = ((w_idx + dwo >= 0) & (w_idx + dwo < W)).astype(f32)
            taps.append(jnp.kron(colmask, w_dw[kh, kw]))     # (W*Cmid,)
    w_dw_lanes = jnp.stack(taps, axis=0)                     # (k*k, W*Cmid)
    b_dw_l = jnp.tile(params["b_dw"].reshape(1, Cmid).astype(f32), (1, W))

    # project weights: block matmul that also folds the stride-s column pick
    sel = (w_idx[:, None] == (jnp.arange(Wout) * stride)[None, :]).astype(f32)
    w_proj_bd = jnp.kron(sel, w_proj)                        # (W*Cmid, Wout*Cout)
    b_proj_l = jnp.tile(params["b_proj"].reshape(1, Cout).astype(f32), (1, Wout))

    ins += [w_dw_lanes, b_dw_l, w_proj_bd, b_proj_l]
    in_specs += [pl.BlockSpec(w_dw_lanes.shape, lambda i: (0, 0)),
                 pl.BlockSpec(b_dw_l.shape, lambda i: (0, 0)),
                 pl.BlockSpec(w_proj_bd.shape, lambda i: (0, 0)),
                 pl.BlockSpec(b_proj_l.shape, lambda i: (0, 0))]

    scratch = []
    if stride > 1:
        scratch.append(pltpu.VMEM((N * H, W * Cmid), f32))

    kernel = _make_mbconv_kernel(k=k, stride=stride, H=H, W=W, cmid=Cmid,
                                 expand=expand, use_skip=use_skip)

    # Whole batch in one grid step: per-step overhead amortized and N*H fused
    # into the matmul M dimension (tiny shapes fit VMEM trivially).
    # TODO(synk): for production-size images (v7x 64 MiB VMEM) this becomes a
    # "parallel" grid over batch/row strips with a (k-1)-row halo.
    out = pl.pallas_call(
        kernel,
        out_shape=jax.ShapeDtypeStruct((N * Hout, Wout * Cout), f32),
        grid_spec=pltpu.PrefetchScalarGridSpec(
            num_scalar_prefetch=0,
            grid=(1,),
            in_specs=in_specs,
            out_specs=pl.BlockSpec((N * Hout, Wout * Cout), lambda i: (i, 0)),
            scratch_shapes=scratch,
        ),
        compiler_params=pltpu.CompilerParams(
            dimension_semantics=("parallel",),
            vmem_limit_bytes=32 * 1024 * 1024,
        ),
    )(*ins)

    out = out.reshape(N, Hout, Wout, Cout)
    return jnp.transpose(out, (0, 3, 1, 2))                  # NCHW


# --------------------------------------------------------------------------
# Pure-JAX NCHW reference (mirrors PyTorch semantics) for verification.
# --------------------------------------------------------------------------
def mbconv_ref(x_nchw, params, *, k, stride, expand_ratio):
    dn = ("NCHW", "OIHW", "NCHW")
    pad = (k - 1) // 2
    x = x_nchw.astype(jnp.float32)
    identity = x
    Cin = x.shape[1]
    Cout = params["w_proj"].shape[1]

    def relu6(v):
        return jnp.clip(v, 0.0, 6.0)

    if expand_ratio != 1:
        w = jnp.transpose(params["w_exp"], (1, 0))[:, :, None, None]
        x = lax.conv_general_dilated(x, w, (1, 1), [(0, 0), (0, 0)],
                                     dimension_numbers=dn)
        x = relu6(x + params["b_exp"].reshape(1, -1, 1, 1))

    Cmid = params["w_dw"].shape[2]
    w = jnp.transpose(params["w_dw"], (2, 0, 1))[:, None, :, :]  # (Cmid,1,k,k)
    x = lax.conv_general_dilated(x, w, (stride, stride),
                                 [(pad, pad), (pad, pad)],
                                 dimension_numbers=dn,
                                 feature_group_count=Cmid)
    x = relu6(x + params["b_dw"].reshape(1, -1, 1, 1))

    w = jnp.transpose(params["w_proj"], (1, 0))[:, :, None, None]
    x = lax.conv_general_dilated(x, w, (1, 1), [(0, 0), (0, 0)],
                                 dimension_numbers=dn)
    x = x + params["b_proj"].reshape(1, -1, 1, 1)

    if stride == 1 and Cin == Cout:
        x = x + identity
    return x


# --------------------------------------------------------------------------
if __name__ == "__main__":
    # TODO(synk): with_bn=True branch is unreachable in the reference module
    # (self._bn0 is never constructed); eval-mode BN would fold into the
    # expand conv weights/bias wrapper-side.
    key = jax.random.PRNGKey(0)

    def make_params(pkey, Cin, Cmid, Cout, k):
        ks = jax.random.split(pkey, 6)
        return {
            "w_exp":  0.2 * jax.random.normal(ks[0], (Cin, Cmid), jnp.float32),
            "b_exp":  0.1 * jax.random.normal(ks[1], (1, Cmid), jnp.float32),
            "w_dw":   0.2 * jax.random.normal(ks[2], (k, k, Cmid), jnp.float32),
            "b_dw":   0.1 * jax.random.normal(ks[3], (1, Cmid), jnp.float32),
            "w_proj": 0.2 * jax.random.normal(ks[4], (Cmid, Cout), jnp.float32),
            "b_proj": 0.1 * jax.random.normal(ks[5], (1, Cout), jnp.float32),
        }

    configs = [
        # inp=4, final_oup=4, k=3, s=1, expand_ratio=4  -> identity skip path
        dict(N=2, Cin=4, Cout=4, H=16, W=16, k=3, stride=1, expand_ratio=4),
        # inp=8, final_oup=16, k=5, s=2, expand_ratio=6 -> strided, no skip
        dict(N=2, Cin=8, Cout=16, H=16, W=16, k=5, stride=2, expand_ratio=6),
    ]

    for cfg in configs:
        key, kp, kx = jax.random.split(key, 3)
        Cmid = cfg["Cin"] * cfg["expand_ratio"]
        params = make_params(kp, cfg["Cin"], Cmid, cfg["Cout"], cfg["k"])
        x = jax.random.normal(
            kx, (cfg["N"], cfg["Cin"], cfg["H"], cfg["W"]), jnp.float32)

        out = mbconv_block(x, params, k=cfg["k"], stride=cfg["stride"],
                           expand_ratio=cfg["expand_ratio"])
        out = jax.block_until_ready(out)

        ref = mbconv_ref(x, params, k=cfg["k"], stride=cfg["stride"],
                         expand_ratio=cfg["expand_ratio"])
        np.testing.assert_allclose(np.asarray(out), np.asarray(ref),
                                   rtol=1e-4, atol=1e-4)

    print("KERNEL_OK")
</pallas_src>

<mosaic_0001>
module attributes {stable_mosaic.version = 11 : i64} {
  func.func @kernel(%arg0: i32, %arg1: memref<32x64xf32, #tpu.memory_space<vmem>>, %arg2: memref<64x256xf32, #tpu.memory_space<vmem>>, %arg3: memref<1x256xf32, #tpu.memory_space<vmem>>, %arg4: memref<9x256xf32, #tpu.memory_space<vmem>>, %arg5: memref<1x256xf32, #tpu.memory_space<vmem>>, %arg6: memref<256x64xf32, #tpu.memory_space<vmem>>, %arg7: memref<1x64xf32, #tpu.memory_space<vmem>>, %arg8: memref<32x64xf32, #tpu.memory_space<vmem>>) attributes {dimension_semantics = [#tpu.dimension_semantics<parallel>], iteration_bounds = array<i64: 1>, scalar_prefetch = 0 : i64, scratch_operands = 0 : i64, tpu.core_type = #tpu.core_type<tc>, window_params = [{transform_indices = @transform_0, window_bounds = array<i64: 32, 64>}, {pipeline_mode = #tpu.pipeline_mode<synchronous>, transform_indices = @transform_1, window_bounds = array<i64: 64, 256>}, {pipeline_mode = #tpu.pipeline_mode<synchronous>, transform_indices = @transform_2, window_bounds = array<i64: 1, 256>}, {pipeline_mode = #tpu.pipeline_mode<synchronous>, transform_indices = @transform_3, window_bounds = array<i64: 9, 256>}, {pipeline_mode = #tpu.pipeline_mode<synchronous>, transform_indices = @transform_4, window_bounds = array<i64: 1, 256>}, {pipeline_mode = #tpu.pipeline_mode<synchronous>, transform_indices = @transform_5, window_bounds = array<i64: 256, 64>}, {pipeline_mode = #tpu.pipeline_mode<synchronous>, transform_indices = @transform_6, window_bounds = array<i64: 1, 64>}, {transform_indices = @transform_7, window_bounds = array<i64: 32, 64>}]} {
    %c0 = arith.constant 0 : index
    %c0_0 = arith.constant 0 : index
    %0 = vector.load %arg1[%c0, %c0_0] : memref<32x64xf32, #tpu.memory_space<vmem>>, vector<32x64xf32>
    %c0_1 = arith.constant 0 : index
    %c0_2 = arith.constant 0 : index
    %1 = vector.load %arg2[%c0_1, %c0_2] : memref<64x256xf32, #tpu.memory_space<vmem>>, vector<64x256xf32>
    %cst = arith.constant dense<0.000000e+00> : vector<32x256xf32>
    %2 = tpu.matmul %0, %1, %cst {dimension_numbers = #tpu.dot_dimension_numbers<[1], [0], [0], [1], [0, 0, 1, 1], [], []>} : vector<32x64xf32>, vector<64x256xf32>, vector<32x256xf32> -> vector<32x256xf32>
    %c0_3 = arith.constant 0 : index
    %c0_4 = arith.constant 0 : index
    %3 = vector.load %arg3[%c0_3, %c0_4] : memref<1x256xf32, #tpu.memory_space<vmem>>, vector<1x256xf32>
    %4 = vector.broadcast %3 : vector<1x256xf32> to vector<32x256xf32>
    %5 = arith.addf %2, %4 : vector<32x256xf32>
    %cst_5 = arith.constant 0.000000e+00 : f32
    %6 = vector.broadcast %cst_5 : f32 to vector<32x256xf32>
    %7 = arith.maximumf %5, %6 : vector<32x256xf32>
    %cst_6 = arith.constant 6.000000e+00 : f32
    %8 = vector.broadcast %cst_6 : f32 to vector<32x256xf32>
    %9 = arith.minimumf %7, %8 : vector<32x256xf32>
    %10 = tpu.iota {dimensions = array<i32: 0>} : vector<32x1xi32>
    %c16_i32 = arith.constant 16 : i32
    %c0_i32 = arith.constant 0 : i32
    %11 = arith.cmpi eq, %c16_i32, %c0_i32 : i32
    %c1_i32 = arith.constant 1 : i32
    %12 = arith.select %11, %c1_i32, %c16_i32 : i32
    %13 = vector.broadcast %12 : i32 to vector<32x1xi32>
    %14 = arith.remsi %10, %13 : vector<32x1xi32>
    %c0_i32_7 = arith.constant 0 : i32
    %15 = vector.broadcast %c0_i32_7 : i32 to vector<32x1xi32>
    %16 = arith.cmpi ne, %14, %15 : vector<32x1xi32>
    %c0_i32_8 = arith.constant 0 : i32
    %17 = vector.broadcast %c0_i32_8 : i32 to vector<32x1xi32>
    %18 = arith.cmpi slt, %14, %17 : vector<32x1xi32>
    %c0_i32_9 = arith.constant 0 : i32
    %19 = arith.cmpi slt, %12, %c0_i32_9 : i32
    %20 = vector.broadcast %19 : i1 to vector<32x1xi1>
    %21 = vector.broadcast %20 : vector<32x1xi1> to vector<32x1xi1>
    %22 = arith.xori %18, %21 : vector<32x1xi1>
    %23 = arith.andi %22, %16 : vector<32x1xi1>
    %24 = vector.broadcast %12 : i32 to vector<32x1xi32>
    %25 = arith.addi %14, %24 : vector<32x1xi32>
    %26 = arith.select %23, %25, %14 : vector<32x1xi1>, vector<32x1xi32>
    %c0_10 = arith.constant 0 : index
    %c0_11 = arith.constant 0 : index
    %27 = vector.load %arg4[%c0_10, %c0_11] : memref<9x256xf32, #tpu.memory_space<vmem>>, vector<9x256xf32>
    %cst_12 = arith.constant 0.000000e+00 : f32
    %28 = vector.broadcast %cst_12 : f32 to vector<32x256xf32>
    %c-1_i32 = arith.constant -1 : i32
    %29 = vector.broadcast %c-1_i32 : i32 to vector<32x1xi32>
    %30 = arith.addi %26, %29 : vector<32x1xi32>
    %c0_i32_13 = arith.constant 0 : i32
    %31 = vector.broadcast %c0_i32_13 : i32 to vector<32x1xi32>
    %32 = arith.cmpi sge, %30, %31 : vector<32x1xi32>
    %c-1_i32_14 = arith.constant -1 : i32
    %33 = vector.broadcast %c-1_i32_14 : i32 to vector<32x1xi32>
    %34 = arith.addi %26, %33 : vector<32x1xi32>
    %c16_i32_15 = arith.constant 16 : i32
    %35 = vector.broadcast %c16_i32_15 : i32 to vector<32x1xi32>
    %36 = arith.cmpi slt, %34, %35 : vector<32x1xi32>
    %37 = arith.andi %32, %36 : vector<32x1xi1>
    %38 = arith.extui %37 : vector<32x1xi1> to vector<32x1xi32>
    %39 = arith.sitofp %38 : vector<32x1xi32> to vector<32x1xf32>
    %c1_i32_16 = arith.constant 1 : i32
    %40 = tpu.dynamic_rotate %9 by %c1_i32_16 dim 0 : vector<32x256xf32>, i32 -> vector<32x256xf32>
    %41 = vector.broadcast %39 : vector<32x1xf32> to vector<32x256xf32>
    %42 = arith.mulf %40, %41 : vector<32x256xf32>
    %c16_i32_17 = arith.constant 16 : i32
    %43 = tpu.dynamic_rotate %42 by %c16_i32_17 dim 1 : vector<32x256xf32>, i32 -> vector<32x256xf32>
    %44 = vector.extract_strided_slice %27 {offsets = [0, 0], sizes = [1, 256], strides = [1, 1]} : vector<9x256xf32> to vector<1x256xf32>
    %45 = vector.broadcast %44 : vector<1x256xf32> to vector<32x256xf32>
    %46 = arith.mulf %43, %45 : vector<32x256xf32>
    %47 = arith.addf %28, %46 : vector<32x256xf32>
    %48 = vector.extract_strided_slice %27 {offsets = [1, 0], sizes = [1, 256], strides = [1, 1]} : vector<9x256xf32> to vector<1x256xf32>
    %49 = vector.broadcast %48 : vector<1x256xf32> to vector<32x256xf32>
    %50 = arith.mulf %42, %49 : vector<32x256xf32>
    %51 = arith.addf %47, %50 : vector<32x256xf32>
    %c240_i32 = arith.constant 240 : i32
    %52 = tpu.dynamic_rotate %42 by %c240_i32 dim 1 : vector<32x256xf32>, i32 -> vector<32x256xf32>
    %53 = vector.extract_strided_slice %27 {offsets = [2, 0], sizes = [1, 256], strides = [1, 1]} : vector<9x256xf32> to vector<1x256xf32>
    %54 = vector.broadcast %53 : vector<1x256xf32> to vector<32x256xf32>
    %55 = arith.mulf %52, %54 : vector<32x256xf32>
    %56 = arith.addf %51, %55 : vector<32x256xf32>
    %c16_i32_18 = arith.constant 16 : i32
    %57 = tpu.dynamic_rotate %9 by %c16_i32_18 dim 1 : vector<32x256xf32>, i32 -> vector<32x256xf32>
    %58 = vector.extract_strided_slice %27 {offsets = [3, 0], sizes = [1, 256], strides = [1, 1]} : vector<9x256xf32> to vector<1x256xf32>
    %59 = vector.broadcast %58 : vector<1x256xf32> to vector<32x256xf32>
    %60 = arith.mulf %57, %59 : vector<32x256xf32>
    %61 = arith.addf %56, %60 : vector<32x256xf32>
    %62 = vector.extract_strided_slice %27 {offsets = [4, 0], sizes = [1, 256], strides = [1, 1]} : vector<9x256xf32> to vector<1x256xf32>
    %63 = vector.broadcast %62 : vector<1x256xf32> to vector<32x256xf32>
    %64 = arith.mulf %9, %63 : vector<32x256xf32>
    %65 = arith.addf %61, %64 : vector<32x256xf32>
    %c240_i32_19 = arith.constant 240 : i32
    %66 = tpu.dynamic_rotate %9 by %c240_i32_19 dim 1 : vector<32x256xf32>, i32 -> vector<32x256xf32>
    %67 = vector.extract_strided_slice %27 {offsets = [5, 0], sizes = [1, 256], strides = [1, 1]} : vector<9x256xf32> to vector<1x256xf32>
    %68 = vector.broadcast %67 : vector<1x256xf32> to vector<32x256xf32>
    %69 = arith.mulf %66, %68 : vector<32x256xf32>
    %70 = arith.addf %65, %69 : vector<32x256xf32>
    %c1_i32_20 = arith.constant 1 : i32
    %71 = vector.broadcast %c1_i32_20 : i32 to vector<32x1xi32>
    %72 = arith.addi %26, %71 : vector<32x1xi32>
    %c0_i32_21 = arith.constant 0 : i32
    %73 = vector.broadcast %c0_i32_21 : i32 to vector<32x1xi32>
    %74 = arith.cmpi sge, %72, %73 : vector<32x1xi32>
    %c1_i32_22 = arith.constant 1 : i32
    %75 = vector.broadcast %c1_i32_22 : i32 to vector<32x1xi32>
    %76 = arith.addi %26, %75 : vector<32x1xi32>
    %c16_i32_23 = arith.constant 16 : i32
    %77 = vector.broadcast %c16_i32_23 : i32 to vector<32x1xi32>
    %78 = arith.cmpi slt, %76, %77 : vector<32x1xi32>
    %79 = arith.andi %74, %78 : vector<32x1xi1>
    %80 = arith.extui %79 : vector<32x1xi1> to vector<32x1xi32>
    %81 = arith.sitofp %80 : vector<32x1xi32> to vector<32x1xf32>
    %c31_i32 = arith.constant 31 : i32
    %82 = tpu.dynamic_rotate %9 by %c31_i32 dim 0 : vector<32x256xf32>, i32 -> vector<32x256xf32>
    %83 = vector.broadcast %81 : vector<32x1xf32> to vector<32x256xf32>
    %84 = arith.mulf %82, %83 : vector<32x256xf32>
    %c16_i32_24 = arith.constant 16 : i32
    %85 = tpu.dynamic_rotate %84 by %c16_i32_24 dim 1 : vector<32x256xf32>, i32 -> vector<32x256xf32>
    %86 = vector.extract_strided_slice %27 {offsets = [6, 0], sizes = [1, 256], strides = [1, 1]} : vector<9x256xf32> to vector<1x256xf32>
    %87 = vector.broadcast %86 : vector<1x256xf32> to vector<32x256xf32>
    %88 = arith.mulf %85, %87 : vector<32x256xf32>
    %89 = arith.addf %70, %88 : vector<32x256xf32>
    %90 = vector.extract_strided_slice %27 {offsets = [7, 0], sizes = [1, 256], strides = [1, 1]} : vector<9x256xf32> to vector<1x256xf32>
    %91 = vector.broadcast %90 : vector<1x256xf32> to vector<32x256xf32>
    %92 = arith.mulf %84, %91 : vector<32x256xf32>
    %93 = arith.addf %89, %92 : vector<32x256xf32>
    %c240_i32_25 = arith.constant 240 : i32
    %94 = tpu.dynamic_rotate %84 by %c240_i32_25 dim 1 : vector<32x256xf32>, i32 -> vector<32x256xf32>
    %95 = vector.extract_strided_slice %27 {offsets = [8, 0], sizes = [1, 256], strides = [1, 1]} : vector<9x256xf32> to vector<1x256xf32>
    %96 = vector.broadcast %95 : vector<1x256xf32> to vector<32x256xf32>
    %97 = arith.mulf %94, %96 : vector<32x256xf32>
    %98 = arith.addf %93, %97 : vector<32x256xf32>
    %c0_26 = arith.constant 0 : index
    %c0_27 = arith.constant 0 : index
    %99 = vector.load %arg5[%c0_26, %c0_27] : memref<1x256xf32, #tpu.memory_space<vmem>>, vector<1x256xf32>
    %100 = vector.broadcast %99 : vector<1x256xf32> to vector<32x256xf32>
    %101 = arith.addf %98, %100 : vector<32x256xf32>
    %cst_28 = arith.constant 0.000000e+00 : f32
    %102 = vector.broadcast %cst_28 : f32 to vector<32x256xf32>
    %103 = arith.maximumf %101, %102 : vector<32x256xf32>
    %cst_29 = arith.constant 6.000000e+00 : f32
    %104 = vector.broadcast %cst_29 : f32 to vector<32x256xf32>
    %105 = arith.minimumf %103, %104 : vector<32x256xf32>
    %c0_30 = arith.constant 0 : index
    %c0_31 = arith.constant 0 : index
    %106 = vector.load %arg6[%c0_30, %c0_31] : memref<256x64xf32, #tpu.memory_space<vmem>>, vector<256x64xf32>
    %cst_32 = arith.constant dense<0.000000e+00> : vector<32x64xf32>
    %107 = tpu.matmul %105, %106, %cst_32 {dimension_numbers = #tpu.dot_dimension_numbers<[1], [0], [0], [1], [0, 0, 1, 1], [], []>} : vector<32x256xf32>, vector<256x64xf32>, vector<32x64xf32> -> vector<32x64xf32>
    %c0_33 = arith.constant 0 : index
    %c0_34 = arith.constant 0 : index
    %108 = vector.load %arg7[%c0_33, %c0_34] : memref<1x64xf32, #tpu.memory_space<vmem>>, vector<1x64xf32>
    %109 = vector.broadcast %108 : vector<1x64xf32> to vector<32x64xf32>
    %110 = arith.addf %107, %109 : vector<32x64xf32>
    %111 = arith.addf %110, %0 : vector<32x64xf32>
    %c0_35 = arith.constant 0 : index
    %c0_36 = arith.constant 0 : index
    %112 = vector.load %arg8[%c0_35, %c0_36] : memref<32x64xf32, #tpu.memory_space<vmem>>, vector<32x64xf32>
    tpu.vector_store %arg8[%c0_35, %c0_36], %111 {strides = array<i32>} : memref<32x64xf32, #tpu.memory_space<vmem>>, vector<32x64xf32>,
    return
  }
  func.func @transform_0(%arg0: i32) -> (i32, i32) {
    %c0_i32 = arith.constant 0 : i32
    %c0_i32_0 = arith.constant 0 : i32
    return %arg0, %c0_i32 : i32, i32
  }
  func.func @transform_1(%arg0: i32) -> (i32, i32) {
    %c0_i32 = arith.constant 0 : i32
    %c0_i32_0 = arith.constant 0 : i32
    %c0_i32_1 = arith.constant 0 : i32
    return %c0_i32, %c0_i32_0 : i32, i32
  }
  func.func @transform_2(%arg0: i32) -> (i32, i32) {
    %c0_i32 = arith.constant 0 : i32
    %c0_i32_0 = arith.constant 0 : i32
    %c0_i32_1 = arith.constant 0 : i32
    return %c0_i32, %c0_i32_0 : i32, i32
  }
  func.func @transform_3(%arg0: i32) -> (i32, i32) {
    %c0_i32 = arith.constant 0 : i32
    %c0_i32_0 = arith.constant 0 : i32
    %c0_i32_1 = arith.constant 0 : i32
    return %c0_i32, %c0_i32_0 : i32, i32
  }
  func.func @transform_4(%arg0: i32) -> (i32, i32) {
    %c0_i32 = arith.constant 0 : i32
    %c0_i32_0 = arith.constant 0 : i32
    %c0_i32_1 = arith.constant 0 : i32
    return %c0_i32, %c0_i32_0 : i32, i32
  }
  func.func @transform_5(%arg0: i32) -> (i32, i32) {
    %c0_i32 = arith.constant 0 : i32
    %c0_i32_0 = arith.constant 0 : i32
    %c0_i32_1 = arith.constant 0 : i32
    return %c0_i32, %c0_i32_0 : i32, i32
  }
  func.func @transform_6(%arg0: i32) -> (i32, i32) {
    %c0_i32 = arith.constant 0 : i32
    %c0_i32_0 = arith.constant 0 : i32
    %c0_i32_1 = arith.constant 0 : i32
    return %c0_i32, %c0_i32_0 : i32, i32
  }
  func.func @transform_7(%arg0: i32) -> (i32, i32) {
    %c0_i32 = arith.constant 0 : i32
    %c0_i32_0 = arith.constant 0 : i32
    return %arg0, %c0_i32 : i32, i32
  }
}

</mosaic_0001>

<bundles_post_ra>
// kernel: mbconv_block.1
= control target key start
LH: loop header
LB: loop body
LE: loop exit
PB: predicated region body
PF: predicated region fallthrough
CT: control target
= control target key end

     0   :  { %v977_v3 = vmov 0.0   ;;  %vm58_vm0 = vcmask 523264   ;;  %v48_v29 = vlaneseq  ;;  %s979_s19 = smov 112   ;;  %s1822_s1 = inlined_call_operand.vmem [shape: f32[64,256], index: 1, kind: input, shape index: {}]   ;;  %s1823_s0 = inlined_call_operand.vmem [shape: f32[32,64], index: 0, kind: input, shape index: {}]   ;;  %s1824_s2 = inlined_call_operand.vmem [shape: f32[1,256], index: 2, kind: input, shape index: {}]   ;;  %s1825_s5 = inlined_call_operand.vmem [shape: f32[256,64], index: 5, kind: input, shape index: {}]   ;;  %s1826_s3 = inlined_call_operand.vmem [shape: f32[9,256], index: 3, kind: input, shape index: {}]   ;;  %s1827_s4 = inlined_call_operand.vmem [shape: f32[1,256], index: 4, kind: input, shape index: {}]   ;;  %s1828_s6 = inlined_call_operand.vmem [shape: f32[1,64], index: 6, kind: input, shape index: {}]   ;;  %s1829_s7 = inlined_call_operand.vmem [shape: f32[32,64], index: 7, kind: output, shape index: {}]  }
   0x1   :  { %v31_v0 = vld [vmem:[%s1822_s1 + $0x8] sm:$0xff]  ;;  %v33_v1 = vld [vmem:[%s1822_s1 + $0x18] sm:$0xff]  ;;  %v30_v2 = vld [vmem:[%s1822_s1] sm:$0xff]  ;;  %135 = vmatprep.mubr.f32.mxu0 %v977_v3 }
   0x2   :  { %v922_v4 = vpack.c.bf16 %v33_v1, %v31_v0  ;;  %v32_v5 = vld [vmem:[%s1822_s1 + $0x10] sm:$0xff]  ;;  %v35_v6 = vld [vmem:[%s1822_s1 + $0x28] sm:$0xff]  ;;  %v37_v7 = vld [vmem:[%s1822_s1 + $0x38] sm:$0xff]  ;;  %v1089_v30 = vshrl.u32 %v48_v29, 7 }
   0x3   :  { %v924_v8 = vpack.c.bf16 %v32_v5, %v30_v2  ;;  %v926_v9 = vpack.c.bf16 %v37_v7, %v35_v6  ;;  %v34_v10 = vld [vmem:[%s1822_s1 + $0x20] sm:$0xff]  ;;  %v36_v11 = vld [vmem:[%s1822_s1 + $0x30] sm:$0xff]  ;;  %v39_v12 = vld [vmem:[%s1822_s1 + $0x48] sm:$0xff] }
   0x4   :  { %923 = vmatprep.subr.bf16.mxu0 %v922_v4  ;;  %v41_v13 = vld [vmem:[%s1822_s1 + $0x58] sm:$0xff]  ;;  %v928_v14 = vpack.c.bf16 %v36_v11, %v34_v10  ;;  %v38_v16 = vld [vmem:[%s1822_s1 + $0x40] sm:$0xff]  ;;  %v40_v17 = vld [vmem:[%s1822_s1 + $0x50] sm:$0xff]  ;;  %v1092_v31 = vsub.s32 0, %v1089_v30  ;;  %v1098_v33 = vsub.s32 1, %v1089_v30  ;;  %vm265_vm1 = vcmp.lt.s32.totalorder %v1089_v30, 1 }
   0x5   :  { %925 = vmatpush1.bf16.msra.mxu0 %v924_v8  ;;  %v930_v15 = vpack.c.bf16 %v41_v13, %v39_v12  ;;  %v43_v18 = vld [vmem:[%s1822_s1 + $0x68] sm:$0xff]  ;;  %v45_v19 = vld [vmem:[%s1822_s1 + $0x78] sm:$0xff]  ;;  %v932_v20 = vpack.c.bf16 %v40_v17, %v38_v16  ;;  %v42_v22 = vld [vmem:[%s1822_s1 + $0x60] sm:$0xff]  ;;  %vm558_vm2 = vcmp.lt.s32.totalorder %v1089_v30, 7 }
   0x6   :  { %927 = vmatprep.subr.bf16.mxu0 %v926_v9  ;;  %v934_v21 = vpack.c.bf16 %v45_v19, %v43_v18  ;;  %v44_v23 = vld [vmem:[%s1822_s1 + $0x70] sm:$0xff]  ;;  %v26_v25 = vld [vmem:[%s1823_s0] sm:$0xff]  ;;  %v27_v26 = vld [vmem:[%s1823_s0 + $0x8] sm:$0xff]  ;;  %v179_v19 = vadd.s32 16, %v1089_v30 }
   0x7   :  { %v936_v24 = vpack.c.bf16 %v44_v23, %v42_v22  ;;  %v28_v27 = vld [vmem:[%s1823_s0 + $0x10] sm:$0xff]  ;;  %v29_v28 = vld [vmem:[%s1823_s0 + $0x18] sm:$0xff]  ;;  %v46_v32 = vld [vmem:[%s1824_s2] sm:$0x3]  ;;  %s978_s2 = smov 16  }
   0x8   :  { %v1101_v34 = vrot.slane %v46_v32, %v1092_v31  ;;  %v1104_v35 = vrot.slane %v46_v32, %v1098_v33 }
   0x9   :  { %929 = vmatpush1.bf16.msra.mxu0 %v928_v14 }
   0xa   :  { %931 = vmatprep.subr.bf16.mxu0 %v930_v15 }
   0xd   :  { %933 = vmatpush1.bf16.msra.mxu0 %v932_v20  ;;  %v199_v20 = vand.u32 15, %v179_v19 }
   0xe   :  { %935 = vmatprep.subr.bf16.mxu0 %v934_v21 }
   0xf   :  { %v235_v23 = vadd.s32 4294967295, %v199_v20 }
  0x11   :  { %937 = vmatpush1.bf16.msra.mxu0 %v936_v24  ;;  %v178_v24 = vadd.s32 8, %v1089_v30  ;;  %vm239_vm3 = vcmp.ge.s32.totalorder %v235_v23, 0  ;;  %v180_v23 = vadd.s32 24, %v1089_v30 }
  0x14   :  { %867 = vmatmul.mubr.msk.f32.vlgmr.msra.gmra.mrb[0].mxu0 %vm58_vm0, %v26_v25 }
  0x15   :  { %141 = vmatprep.mubr.f32.mxu0 %v977_v3 }
  0x18   :  { %868 = vmatmul.mubr.msk.f32.gmra.mrb[2].mxu0 %vm58_vm0, %v27_v26 }
  0x19   :  { %147 = vmatprep.mubr.f32.mxu0 %v977_v3 }
  0x1c   :  { %869 = vmatmul.mubr.msk.f32.gmra.mrb[4].mxu0 %vm58_vm0, %v28_v27  ;;  %v192_v27 = vand.u32 15, %v178_v24 }
  0x1d   :  { %153 = vmatprep.mubr.f32.mxu0 %v977_v3 }
  0x20   :  { %870 = vmatmul.mubr.msk.f32.gmra.mrb[6].mxu0 %vm58_vm0, %v29_v28 }
  0xe7   :  { %v137_v36 = vpop.f32.mrb[0].mxu0 }
  0xe8   :  { %v138_v37 = vadd.f32 %v137_v36, %v1101_v34  ;;  %v139_v38 = vpop.f32.mrb[1].mxu0 }
  0xe9   :  { %v140_v39 = vadd.f32 %v139_v38, %v1104_v35 }
  0xea   :  { %v160_v40 = vmax.f32 %v138_v37, 0.0 }
  0xeb   :  { %v161_v41 = vmax.f32 %v140_v39, 0.0  ;;  %v143_v42 = vpop.f32.mrb[2].mxu0  ;;  %v185_v39 = vand.u32 15, %v1089_v30 }
  0xec   :  { %v1108_v43 = vmin.f32 %v160_v40, 6.0  ;;  %v144_v44 = vadd.f32 %v143_v42, %v1101_v34  ;;  %v145_v45 = vpop.f32.mrb[3].mxu0 }
  0xed   :  { %v1111_v46 = vmin.f32 %v161_v41, 6.0  ;;  %v146_v47 = vadd.f32 %v145_v45, %v1104_v35  ;;  %v233_v42 = vadd.s32 4294967295, %v185_v39  ;;  %v206_v39 = vand.u32 15, %v180_v23 }
  0xee   :  { %v162_v48 = vmax.f32 %v144_v44, 0.0  ;;  %406 = vrot.lane.b32.xlu0 %v1108_v43, %s978_s2  ;;  %v257_v56 = vrot.slane %v1108_v43, 7  ;;  %v550_v59 = vrot.slane %v1108_v43, 1 }
  0xef   :  { %v163_v49 = vmax.f32 %v146_v47, 0.0  ;;  %v149_v50 = vpop.f32.mrb[4].mxu0  ;;  %414 = vrot.lane.b32.xlu1 %v1111_v46, %s978_s2  ;;  %v258_v63 = vrot.slane %v1111_v46, 7  ;;  %v551_v7 = vrot.slane %v1111_v46, 1  ;;  %v747_v47 = vld [vmem:[%s1825_s5 + $0x80] sm:$0xff]  ;;  %vm237_vm5 = vcmp.ge.s32.totalorder %v233_v42, 0 }
  0xf0   :  { %v1118_v51 = vmin.f32 %v162_v48, 6.0  ;;  %v150_v52 = vadd.f32 %v149_v50, %v1101_v34  ;;  %v151_v53 = vpop.f32.mrb[5].mxu0  ;;  %v748_v48 = vld [vmem:[%s1825_s5 + $0x88] sm:$0xff] }
  0xf1   :  { %v1122_v54 = vmin.f32 %v163_v49, 6.0  ;;  %v152_v55 = vadd.f32 %v151_v53, %v1104_v35  ;;  %v731_v49 = vld [vmem:[%s1825_s5] sm:$0xff]  ;;  %v732_v53 = vld [vmem:[%s1825_s5 + $0x8] sm:$0xff] }
  0xf2   :  { %v164_v57 = vmax.f32 %v150_v52, 0.0  ;;  %478 = vrot.lane.b32.xlu0 %v1108_v43, %s979_s19  ;;  %v259_v58 = vrot.slane %v1118_v51, 7  ;;  %v552_v60 = vrot.slane %v1118_v51, 1  ;;  %v938_v52 = vpack.c.bf16 %v748_v48, %v747_v47 }
  0xf3   :  { %v165_v61 = vmax.f32 %v152_v55, 0.0  ;;  %v155_v62 = vpop.f32.mrb[6].mxu0  ;;  %486 = vrot.lane.b32.xlu1 %v1111_v46, %s979_s19  ;;  %v260_v0 = vrot.slane %v1122_v54, 7  ;;  %v553_v1 = vrot.slane %v1122_v54, 1 }
  0xf4   :  { %v1137_v2 = vmin.f32 %v164_v57, 6.0  ;;  %v157_v4 = vpop.f32.mrb[7].mxu0  ;;  %v1143_v5 = vsel %vm265_vm1, %v257_v56, %v259_v58  ;;  %v1149_v6 = vsel %vm558_vm2, %v550_v59, %v552_v60  ;;  %v156_v21 = vadd.f32 %v155_v62, %v1101_v34  ;;  %939 = vmatprep.subr.bf16.mxu1 %v938_v52  ;;  %v757_v52 = vld [vmem:[%s1825_s5 + $0xd0] sm:$0xff] }
  0xf5   :  { %v1152_v8 = vmin.f32 %v165_v61, 6.0  ;;  %v1158_v9 = vsel %vm265_vm1, %v258_v63, %v260_v0  ;;  %v1166_v10 = vsel %vm558_vm2, %v551_v7, %v553_v1  ;;  %v158_v22 = vadd.f32 %v157_v4, %v1104_v35  ;;  %v733_v61 = vld [vmem:[%s1825_s5 + $0x10] sm:$0xff]  ;;  %v734_v4 = vld [vmem:[%s1825_s5 + $0x18] sm:$0xff] }
  0xf6   :  { %408 = vrot.lane.b32.xlu0 %v1118_v51, %s978_s2  ;;  %v261_v11 = vrot.slane %v1137_v2, 7  ;;  %v554_v13 = vrot.slane %v1137_v2, 1  ;;  %v166_v25 = vmax.f32 %v156_v21, 0.0  ;;  %v872_v34 = vsel %vm239_vm3, 1.0, %v977_v3  ;;  %v753_v21 = vld [vmem:[%s1825_s5 + $0xb0] sm:$0xff] }
  0xf7   :  { %416 = vrot.lane.b32.xlu1 %v1122_v54, %s978_s2  ;;  %v262_v12 = vrot.slane %v1152_v8, 7  ;;  %v555_v14 = vrot.slane %v1152_v8, 1  ;;  %v167_v26 = vmax.f32 %v158_v22, 0.0  ;;  %v527_v35 = vadd.s32 1, %v192_v27  ;;  %v754_v22 = vld [vmem:[%s1825_s5 + $0xb8] sm:$0xff] }
  0xf8   :  { %v268_v15 = vsel %vm265_vm1, %v259_v58, %v261_v11  ;;  %v561_v17 = vsel %vm558_vm2, %v552_v60, %v554_v13  ;;  %v1214_v28 = vmin.f32 %v166_v25, 6.0  ;;  %v940_v57 = vpack.c.bf16 %v732_v53, %v731_v49  ;;  %v749_v58 = vld [vmem:[%s1825_s5 + $0x90] sm:$0xff]  ;;  %v750_v60 = vld [vmem:[%s1825_s5 + $0x98] sm:$0xff] }
  0xf9   :  { %v269_v16 = vsel %vm265_vm1, %v260_v0, %v262_v12  ;;  %v562_v18 = vsel %vm558_vm2, %v553_v1, %v555_v14  ;;  %v1216_v32 = vmin.f32 %v167_v26, 6.0  ;;  %v1223_v36 = vmul.f32 %v872_v34, %v268_v15  ;;  %v751_v15 = vld [vmem:[%s1825_s5 + $0xa0] sm:$0xff]  ;;  %v737_v25 = vld [vmem:[%s1825_s5 + $0x30] sm:$0xff]  ;;  %v738_v26 = vld [vmem:[%s1825_s5 + $0x38] sm:$0xff] }
  0xfa   :  { %480 = vrot.lane.b32.xlu0 %v1118_v51, %s979_s19  ;;  %v1225_v37 = vmul.f32 %v872_v34, %v269_v16  ;;  %vm535_vm4 = vcmp.lt.s32.totalorder %v527_v35, 16  ;;  %v263_v44 = vrot.slane %v1214_v28, 7  ;;  %941 = vmatpush3.bf16.msra.mxu1 %v940_v57  ;;  %v871_v62 = vsel %vm237_vm5, 1.0, %v977_v3  ;;  %v752_v16 = vld [vmem:[%s1825_s5 + $0xa8] sm:$0xff]  ;;  %v755_v34 = vld [vmem:[%s1825_s5 + $0xc0] sm:$0xff]  ;;  %v758_v53 = vld [vmem:[%s1825_s5 + $0xd8] sm:$0xff] }
  0xfb   :  { %488 = vrot.lane.b32.xlu1 %v1122_v54, %s979_s19  ;;  %1834 = vst [vmem:[#allocation2_spill] sm:$0xff] %v1216_v32  ;;  %v873_v38 = vsel %vm535_vm4, 1.0, %v977_v3  ;;  %v264_v45 = vrot.slane %v1216_v32, 7  ;;  %v942_v1 = vpack.c.bf16 %v750_v60, %v749_v58  ;;  %v950_v24 = vpack.c.bf16 %v754_v22, %v753_v21  ;;  %v756_v35 = vld [vmem:[%s1825_s5 + $0xc8] sm:$0xff]  ;;  %v741_v57 = vld [vmem:[%s1825_s5 + $0x50] sm:$0xff] }
  0xfc   :  { %v1237_v40 = vmul.f32 %v873_v38, %v561_v17  ;;  %v1239_v41 = vmul.f32 %v873_v38, %v562_v18  ;;  %v1258_v50 = vsel %vm265_vm1, %v261_v11, %v263_v44  ;;  %v272_v0 = vsel %vm265_vm1, %v263_v44, %v257_v56  ;;  %v735_v18 = vld [vmem:[%s1825_s5 + $0x20] sm:$0xff]  ;;  %v740_v44 = vld [vmem:[%s1825_s5 + $0x48] sm:$0xff] }
  0xfd   :  { %v1267_v55 = vsel %vm265_vm1, %v262_v12, %v264_v45  ;;  %v944_v11 = vpack.c.bf16 %v734_v4, %v733_v61  ;;  %943 = vmatprep.subr.bf16.mxu1 %v942_v1  ;;  %v1292_v12 = vmul.f32 %v871_v62, %v272_v0  ;;  %v273_v56 = vsel %vm265_vm1, %v264_v45, %v258_v63  ;;  %v736_v63 = vld [vmem:[%s1825_s5 + $0x28] sm:$0xff]  ;;  %v739_v38 = vld [vmem:[%s1825_s5 + $0x40] sm:$0xff]  ;;  %v742_v61 = vld [vmem:[%s1825_s5 + $0x58] sm:$0xff] }
  0xfe   :  { %284 = vrot.lane.b32.xlu0 %v1143_v5, %s978_s2  ;;  %v946_v17 = vpack.c.bf16 %v752_v16, %v751_v15  ;;  %v948_v19 = vpack.c.bf16 %v736_v63, %v735_v18  ;;  %v1314_v20 = vmul.f32 %v871_v62, %v273_v56  ;;  %v952_v27 = vpack.c.bf16 %v738_v26, %v737_v25  ;;  %v759_v62 = vld [vmem:[%s1825_s5 + $0xe0] sm:$0xff]  ;;  %v760_v0 = vld [vmem:[%s1825_s5 + $0xe8] sm:$0xff]  ;;  %v762_v18 = vld [vmem:[%s1825_s5 + $0xf8] sm:$0xff] }
  0xff   :  { %292 = vrot.lane.b32.xlu1 %v1158_v9, %s978_s2  ;;  %945 = vmatpush3.bf16.msra.mxu1 %v944_v11  ;;  %v954_v42 = vpack.c.bf16 %v756_v35, %v755_v34  ;;  %v556_v45 = vrot.slane %v1214_v28, 1  ;;  %v956_v47 = vpack.c.bf16 %v740_v44, %v739_v38  ;;  %v557_v48 = vrot.slane %v1216_v32, 1  ;;  %v743_v4 = vld [vmem:[%s1825_s5 + $0x60] sm:$0xff]  ;;  %v744_v11 = vld [vmem:[%s1825_s5 + $0x68] sm:$0xff]  ;;  %v745_v63 = vld [vmem:[%s1825_s5 + $0x70] sm:$0xff] }
 0x100   :  { %947 = vmatprep.subr.bf16.mxu1 %v946_v17  ;;  %v529_v58 = vadd.s32 1, %v206_v39  ;;  %v958_v60 = vpack.c.bf16 %v758_v53, %v757_v52  ;;  %v960_v1 = vpack.c.bf16 %v742_v61, %v741_v57  ;;  %v964_v56 = vpack.c.bf16 %v744_v11, %v743_v4  ;;  %v761_v17 = vld [vmem:[%s1825_s5 + $0xf0] sm:$0xff]  ;;  %v1464_v52 = vld [vmem:[%s1826_s3] sm:$0xff]  ;;  %v1469_v53 = vld [vmem:[%s1826_s3 + $0x8] sm:$0xff] }
 0x101   :  { %v1355_v49 = vsel %vm558_vm2, %v554_v13, %v556_v45  ;;  %v1372_v13 = vsel %vm558_vm2, %v555_v14, %v557_v48  ;;  %v962_v14 = vpack.c.bf16 %v760_v0, %v759_v62  ;;  %v565_v16 = vsel %vm558_vm2, %v556_v45, %v550_v59  ;;  %v746_v59 = vld [vmem:[%s1825_s5 + $0x78] sm:$0xff] }
 0x102   :  { %359 = vrot.lane.b32.xlu0 %v1143_v5, %s979_s19  ;;  %1835 = vst [vmem:[#allocation3_spill] sm:$0xff] %v1372_v13  ;;  %vm537_vm6 = vcmp.lt.s32.totalorder %v529_v58, 16  ;;  %v566_v22 = vsel %vm558_vm2, %v557_v48, %v551_v7  ;;  %v1481_v61 = vrot.slane %v1469_v53, %v1092_v31  ;;  %v384_v62 = vsub.s32 2, %v1089_v30 }
 0x103   :  { %367 = vrot.lane.b32.xlu1 %v1158_v9, %s979_s19  ;;  %949 = vmatpush3.bf16.msra.mxu1 %v948_v19  ;;  %v874_v15 = vsel %vm537_vm6, 1.0, %v977_v3  ;;  %v966_v3 = vpack.c.bf16 %v762_v18, %v761_v17  ;;  %v968_v19 = vpack.c.bf16 %v746_v59, %v745_v63  ;;  %v432_v4 = vsub.s32 3, %v1089_v30 }
 0x104   :  { %951 = vmatprep.subr.bf16.mxu1 %v950_v24  ;;  %v1416_v21 = vmul.f32 %v874_v15, %v565_v16  ;;  %v1426_v23 = vmul.f32 %v874_v15, %v566_v22  ;;  %v1437_v24 = vand.u32 127, %v48_v29  ;;  %v1500_v18 = vrot.slane %v1464_v52, %v384_v62 }
 0x105   :  { %v1503_v63 = vrot.slane %v1469_v53, %v384_v62  ;;  %v456_v59 = vsub.s32 4, %v1089_v30 }
 0x106   :  { %575 = vrot.lane.b32.xlu0 %v1149_v6, %s978_s2  ;;  %1836 = vst [vmem:[#allocation4_spill] sm:$0xff] %v1416_v21  ;;  %1837 = vst [vmem:[#allocation5_spill] sm:$0xff] %v1426_v23  ;;  %vm300_vm7 = vcmp.lt.s32.totalorder %v1437_v24, 16  ;;  %vm373_vm8 = vcmp.lt.s32.totalorder %v1437_v24, 112 }
 0x107   :  { %583 = vrot.lane.b32.xlu1 %v1166_v10, %s978_s2  ;;  %953 = vmatpush3.bf16.msra.mxu1 %v952_v27 }
 0x108   :  { %955 = vmatprep.subr.bf16.mxu1 %v954_v42 }
 0x10a   :  { %647 = vrot.lane.b32.xlu0 %v1149_v6, %s979_s19 }
 0x10b   :  { %655 = vrot.lane.b32.xlu1 %v1166_v10, %s979_s19  ;;  %957 = vmatpush3.bf16.msra.mxu1 %v956_v47 }
 0x10c   :  { %959 = vmatprep.subr.bf16.mxu1 %v958_v60  ;;  %v1477_v60 = vrot.slane %v1464_v52, %v1092_v31 }
 0x10e   :  { %410 = vrot.lane.b32.xlu0 %v1137_v2, %s978_s2 }
 0x10f   :  { %418 = vrot.lane.b32.xlu1 %v1152_v8, %s978_s2  ;;  %961 = vmatpush3.bf16.msra.mxu1 %v960_v1  ;;  %v1486_v1 = vrot.slane %v1464_v52, %v1098_v33 }
 0x110   :  { %963 = vmatprep.subr.bf16.mxu1 %v962_v14  ;;  %v1490_v14 = vrot.slane %v1469_v53, %v1098_v33 }
 0x112   :  { %412 = vrot.lane.b32.xlu0 %v1214_v28, %s978_s2  ;;  %v344_v22 = vmul.f32 %v1490_v14, %v1158_v9 }
 0x113   :  { %420 = vrot.lane.b32.xlu1 %v1216_v32, %s978_s2  ;;  %965 = vmatpush3.bf16.msra.mxu1 %v964_v56 }
 0x114   :  { %967 = vmatprep.subr.bf16.mxu1 %v966_v3 }
 0x116   :  { %286 = vrot.lane.b32.xlu0 %v1223_v36, %s978_s2 }
 0x117   :  { %294 = vrot.lane.b32.xlu1 %v1225_v37, %s978_s2  ;;  %969 = vmatpush3.bf16.msra.mxu1 %v968_v19  ;;  %v343_v19 = vmul.f32 %v1486_v1, %v1143_v5 }
 0x11a   :  { %361 = vrot.lane.b32.xlu0 %v1223_v36, %s979_s19 }
 0x11b   :  { %369 = vrot.lane.b32.xlu1 %v1225_v37, %s979_s19 }
 0x11e   :  { %577 = vrot.lane.b32.xlu0 %v1237_v40, %s978_s2 }
 0x11f   :  { %585 = vrot.lane.b32.xlu1 %v1239_v41, %s978_s2 }
 0x122   :  { %288 = vrot.lane.b32.xlu0 %v1258_v50, %s978_s2 }
 0x123   :  { %296 = vrot.lane.b32.xlu1 %v1267_v55, %s978_s2 }
 0x126   :  { %363 = vrot.lane.b32.xlu0 %v1258_v50, %s979_s19 }
 0x127   :  { %371 = vrot.lane.b32.xlu1 %v1267_v55, %s979_s19 }
 0x12a   :  { %282 = vrot.lane.b32.xlu0 %v1292_v12, %s978_s2 }
 0x12b   :  { %357 = vrot.lane.b32.xlu1 %v1292_v12, %s979_s19 }
 0x12e   :  { %290 = vrot.lane.b32.xlu0 %v1314_v20, %s978_s2 }
 0x12f   :  { %490 = vrot.lane.b32.xlu1 %v1152_v8, %s979_s19 }
 0x132   :  { %482 = vrot.lane.b32.xlu0 %v1137_v2, %s979_s19 }
 0x133   :  { %365 = vrot.lane.b32.xlu1 %v1314_v20, %s979_s19 }
 0x136   :  { %579 = vrot.lane.b32.xlu0 %v1355_v49, %s978_s2 }
 0x137   :  { %587 = vrot.lane.b32.xlu1 %v1372_v13, %s978_s2 }
 0x13a   :  { %649 = vrot.lane.b32.xlu0 %v1237_v40, %s979_s19 }
 0x13b   :  { %657 = vrot.lane.b32.xlu1 %v1239_v41, %s979_s19 }
 0x13e   :  { %484 = vrot.lane.b32.xlu0 %v1214_v28, %s979_s19 }
 0x13f   :  { %492 = vrot.lane.b32.xlu1 %v1216_v32, %s979_s19 }
 0x142   :  { %581 = vrot.lane.b32.xlu0 %v1416_v21, %s978_s2 }
 0x143   :  { %659 = vrot.lane.b32.xlu1 %v1372_v13, %s979_s19 }
 0x146   :  { %651 = vrot.lane.b32.xlu0 %v1355_v49, %s979_s19 }
 0x147   :  { %589 = vrot.lane.b32.xlu1 %v1426_v23, %s978_s2 }
 0x14a   :  { %653 = vrot.lane.b32.xlu0 %v1416_v21, %s979_s19 }
 0x14b   :  { %661 = vrot.lane.b32.xlu1 %v1426_v23, %s979_s19 }
 0x160   :  { %v407_v7 = vpop.permute.xlu0 %406 }
 0x161   :  { %v415_v25 = vpop.permute.xlu1 %414 }
 0x162   :  { %v1442_v26 = vsel %vm300_vm7, %v407_v7, %v415_v25  ;;  %v1446_v27 = vsel %vm300_vm7, %v415_v25, %v407_v7  ;;  %v1511_v7 = vrot.slane %v1464_v52, %v432_v4 }
 0x164   :  { %v479_v34 = vpop.permute.xlu0 %478 }
 0x165   :  { %v487_v35 = vpop.permute.xlu1 %486 }
 0x166   :  { %v1451_v29 = vsel %vm373_vm8, %v479_v34, %v487_v35  ;;  %v1455_v38 = vsel %vm373_vm8, %v487_v35, %v479_v34  ;;  %v1514_v34 = vrot.slane %v1469_v53, %v432_v4  ;;  %v504_v35 = vsub.s32 5, %v1089_v30 }
 0x167   :  { %v1529_v4 = vrot.slane %v1469_v53, %v456_v59 }
 0x168   :  { %v409_v39 = vpop.permute.xlu0 %408 }
 0x169   :  { %v417_v42 = vpop.permute.xlu1 %416 }
 0x16a   :  { %v423_v44 = vsel %vm300_vm7, %v409_v39, %v417_v42  ;;  %v427_v45 = vsel %vm300_vm7, %v417_v42, %v409_v39 }
 0x16c   :  { %v481_v47 = vpop.permute.xlu0 %480 }
 0x16d   :  { %v489_v48 = vpop.permute.xlu1 %488 }
 0x16e   :  { %v495_v57 = vsel %vm373_vm8, %v481_v47, %v489_v48  ;;  %v499_v58 = vsel %vm373_vm8, %v489_v48, %v481_v47 }
 0x170   :  { %v285_v0 = vpop.permute.xlu0 %284 }
 0x171   :  { %v293_v11 = vpop.permute.xlu1 %292 }
 0x172   :  { %v302_v56 = vsel %vm300_vm7, %v285_v0, %v293_v11  ;;  %v306_v15 = vsel %vm300_vm7, %v293_v11, %v285_v0  ;;  %v1526_v0 = vrot.slane %v1464_v52, %v456_v59  ;;  %v440_v11 = vmul.f32 %v1511_v7, %v427_v45 }
 0x173   :  { %v319_v16 = vmul.f32 %v1477_v60, %v306_v15  ;;  %v320_v17 = vmul.f32 %v1481_v61, %v302_v56  ;;  %v441_v56 = vmul.f32 %v1514_v34, %v423_v44  ;;  %v465_v45 = vmul.f32 %v1529_v4, %v1122_v54 }
 0x174   :  { %v360_v3 = vpop.permute.xlu0 %359  ;;  %v464_v59 = vmul.f32 %v1526_v0, %v1118_v51 }
 0x175   :  { %v368_v25 = vpop.permute.xlu1 %367  ;;  %v351_v47 = vadd.f32 %v343_v19, %v319_v16  ;;  %v352_v5 = vadd.f32 %v344_v22, %v320_v17  ;;  %v1536_v17 = vrot.slane %v1464_v52, %v504_v35  ;;  %v1539_v19 = vrot.slane %v1469_v53, %v504_v35 }
 0x176   :  { %v375_v39 = vsel %vm373_vm8, %v360_v3, %v368_v25  ;;  %v379_v42 = vsel %vm373_vm8, %v368_v25, %v360_v3 }
 0x177   :  { %v392_v48 = vmul.f32 %v1500_v18, %v375_v39  ;;  %v393_v9 = vmul.f32 %v1503_v63, %v379_v42  ;;  %v512_v44 = vmul.f32 %v1536_v17, %v495_v57  ;;  %v513_v42 = vmul.f32 %v1539_v19, %v499_v58 }
 0x178   :  { %v1523_v62 = vpop.permute.xlu0 %575 }
 0x179   :  { %v400_v15 = vadd.f32 %v392_v48, %v351_v47  ;;  %v401_v3 = vadd.f32 %v393_v9, %v352_v5  ;;  %v1533_v16 = vpop.permute.xlu1 %583 }
 0x17b   :  { %v448_v22 = vadd.f32 %v440_v11, %v400_v15  ;;  %v449_v25 = vadd.f32 %v441_v56, %v401_v3 }
 0x17c   :  { %v1545_v39 = vpop.permute.xlu0 %647 }
 0x17d   :  { %v1549_v47 = vpop.permute.xlu1 %655  ;;  %v472_v5 = vadd.f32 %v464_v59, %v448_v22  ;;  %v473_v48 = vadd.f32 %v465_v45, %v449_v25  ;;  %v625_v25 = vsub.s32 7, %v1089_v30  ;;  %v601_v59 = vsub.s32 6, %v1089_v30 }
 0x17f   :  { %v520_v35 = vadd.f32 %v512_v44, %v472_v5  ;;  %v521_v9 = vadd.f32 %v513_v42, %v473_v48  ;;  %v345_v44 = vmul.f32 %v1486_v1, %v1223_v36  ;;  %v346_v42 = vmul.f32 %v1490_v14, %v1225_v37 }
 0x180   :  { %v411_v11 = vpop.permute.xlu0 %410  ;;  %v1578_v37 = vrot.slane %v1464_v52, %v625_v25  ;;  %v1581_v32 = vrot.slane %v1469_v53, %v625_v25 }
 0x181   :  { %v419_v56 = vpop.permute.xlu1 %418 }
 0x182   :  { %v424_v48 = vsel %vm300_vm7, %v411_v11, %v419_v56 }
 0x184   :  { %v1551_v15 = vpop.permute.xlu0 %412 }
 0x185   :  { %v1553_v51 = vpop.permute.xlu1 %420 }
 0x188   :  { %v287_v3 = vpop.permute.xlu0 %286 }
 0x189   :  { %v295_v54 = vpop.permute.xlu1 %294 }
 0x18a   :  { %v303_v23 = vsel %vm300_vm7, %v287_v3, %v295_v54  ;;  %v307_v57 = vsel %vm300_vm7, %v295_v54, %v287_v3  ;;  %v428_v3 = vsel %vm300_vm7, %v419_v56, %v411_v11  ;;  %v1584_v11 = vrot.slane %v1464_v52, %v601_v59 }
 0x18b   :  { %v321_v58 = vmul.f32 %v1477_v60, %v307_v57  ;;  %v322_v22 = vmul.f32 %v1481_v61, %v303_v23  ;;  %v1587_v56 = vrot.slane %v1469_v53, %v601_v59  ;;  %v466_v52 = vmul.f32 %v1526_v0, %v1137_v2 }
 0x18c   :  { %v362_v45 = vpop.permute.xlu0 %361  ;;  %v467_v53 = vmul.f32 %v1529_v4, %v1152_v8 }
 0x18d   :  { %v370_v5 = vpop.permute.xlu1 %369  ;;  %v353_v54 = vadd.f32 %v345_v44, %v321_v58  ;;  %v354_v57 = vadd.f32 %v346_v42, %v322_v22  ;;  %v442_v58 = vmul.f32 %v1511_v7, %v428_v3  ;;  %v443_v22 = vmul.f32 %v1514_v34, %v424_v48 }
 0x18e   :  { %v376_v23 = vsel %vm373_vm8, %v362_v45, %v370_v5  ;;  %v380_v30 = vsel %vm373_vm8, %v370_v5, %v362_v45 }
 0x18f   :  { %v394_v36 = vmul.f32 %v1500_v18, %v376_v23  ;;  %v395_v21 = vmul.f32 %v1503_v63, %v380_v30  ;;  %v634_v30 = vmul.f32 %v1581_v32, %v1239_v41  ;;  %v695_v41 = vld [vmem:[%s1827_s4] sm:$0x3] }
 0x190   :  { %v578_v13 = vpop.permute.xlu0 %577 }
 0x191   :  { %v402_v45 = vadd.f32 %v394_v36, %v353_v54  ;;  %v403_v44 = vadd.f32 %v395_v21, %v354_v57  ;;  %v586_v42 = vpop.permute.xlu1 %585  ;;  %v633_v21 = vmul.f32 %v1578_v37, %v1237_v40  ;;  %v1615_v40 = vmul.f32 %v1526_v0, %v1108_v43 }
 0x192   :  { %v592_v5 = vsel %vm300_vm7, %v578_v13, %v586_v42  ;;  %v596_v25 = vsel %vm300_vm7, %v586_v42, %v578_v13  ;;  %v463_v43 = vmul.f32 %v1529_v4, %v1111_v46  ;;  %v342_v46 = vmul.f32 %v1490_v14, %v1314_v20 }
 0x193   :  { %v450_v59 = vadd.f32 %v442_v58, %v402_v45  ;;  %v451_v23 = vadd.f32 %v443_v22, %v403_v44  ;;  %v609_v3 = vmul.f32 %v1584_v11, %v596_v25  ;;  %v610_v48 = vmul.f32 %v1587_v56, %v592_v5 }
 0x194   :  { %v289_v54 = vpop.permute.xlu0 %288  ;;  %v347_v25 = vmul.f32 %v1486_v1, %v1258_v50  ;;  %v341_v50 = vmul.f32 %v1486_v1, %v1292_v12  ;;  %v439_v12 = vmul.f32 %v1514_v34, %v1442_v26  ;;  %v591_v20 = vsel %vm300_vm7, %v1523_v62, %v1533_v16 }
 0x195   :  { %v617_v13 = vadd.f32 %v609_v3, %v520_v35  ;;  %v618_v57 = vadd.f32 %v610_v48, %v521_v9  ;;  %v297_v36 = vpop.permute.xlu1 %296  ;;  %v1605_v2 = vadd.f32 %v466_v52, %v450_v59  ;;  %v1607_v42 = vadd.f32 %v467_v53, %v451_v23 }
 0x196   :  { %v1622_v35 = vmul.f32 %v1578_v37, %v1149_v6  ;;  %v1626_v9 = vmul.f32 %v1581_v32, %v1166_v10  ;;  %v348_v53 = vmul.f32 %v1490_v14, %v1267_v55  ;;  %v1636_v59 = vmul.f32 %v1578_v37, %v1355_v49  ;;  %v1685_v14 = vld [vmem:[%s1826_s3 + $0x10] ss:$0 sm:$0xff] }
 0x197   :  { %v1609_v8 = vadd.f32 %v633_v21, %v617_v13  ;;  %v1611_v58 = vadd.f32 %v634_v30, %v618_v57  ;;  %v1648_v55 = vmul.f32 %v1526_v0, %v1214_v28  ;;  %v1651_v49 = vrot.slane %v695_v41, %v1092_v31 }
 0x198   :  { %v364_v22 = vpop.permute.xlu0 %363  ;;  %v438_v3 = vmul.f32 %v1511_v7, %v1446_v27  ;;  %v1658_v30 = vrot.slane %v695_v41, %v1098_v33  ;;  %v510_v28 = vmul.f32 %v1536_v17, %v1451_v29  ;;  %v511_v31 = vmul.f32 %v1539_v19, %v1455_v38 }
 0x199   :  { %v372_v45 = vpop.permute.xlu1 %371  ;;  %v595_v33 = vsel %vm300_vm7, %v1533_v16, %v1523_v62  ;;  %v663_v26 = vsel %vm373_vm8, %v1545_v39, %v1549_v47  ;;  %v304_v29 = vsel %vm300_vm7, %v289_v54, %v297_v36  ;;  %v308_v38 = vsel %vm300_vm7, %v297_v36, %v289_v54 }
 0x19a   :  { %v377_v62 = vsel %vm373_vm8, %v364_v22, %v372_v45  ;;  %v381_v0 = vsel %vm373_vm8, %v372_v45, %v364_v22  ;;  %v607_v41 = vmul.f32 %v1584_v11, %v595_v33  ;;  %v324_v22 = vmul.f32 %v1481_v61, %v304_v29 }
 0x19b   :  { %v397_v33 = vmul.f32 %v1503_v63, %v381_v0 }
 0x19c   :  { %v283_v44 = vpop.permute.xlu0 %282 }
 0x19d   :  { %v358_v5 = vpop.permute.xlu1 %357 }
 0x1a0   :  { %v291_v52 = vpop.permute.xlu0 %290 }
 0x1a1   :  { %v301_v6 = vsel %vm300_vm7, %v283_v44, %v291_v52  ;;  %v305_v10 = vsel %vm300_vm7, %v291_v52, %v283_v44  ;;  %v491_v23 = vpop.permute.xlu1 %490  ;;  %v608_v52 = vmul.f32 %v1587_v56, %v591_v20 }
 0x1a2   :  { %v317_v48 = vmul.f32 %v1477_v60, %v305_v10  ;;  %v318_v21 = vmul.f32 %v1481_v61, %v301_v6  ;;  %v323_v6 = vmul.f32 %v1477_v60, %v308_v38  ;;  %v679_v10 = vmul.f32 %v1685_v14, %v663_v26 }
 0x1a4   :  { %v483_v27 = vpop.permute.xlu0 %482  ;;  %v349_v57 = vadd.f32 %v341_v50, %v317_v48  ;;  %v350_v54 = vadd.f32 %v342_v46, %v318_v21  ;;  %v396_v21 = vmul.f32 %v1500_v18, %v377_v62  ;;  %v355_v26 = vadd.f32 %v347_v25, %v323_v6 }
 0x1a5   :  { %v366_v1 = vpop.permute.xlu1 %365  ;;  %v496_v60 = vsel %vm373_vm8, %v483_v27, %v491_v23  ;;  %v500_v61 = vsel %vm373_vm8, %v491_v23, %v483_v27 }
 0x1a6   :  { %v374_v16 = vsel %vm373_vm8, %v358_v5, %v366_v1  ;;  %v378_v13 = vsel %vm373_vm8, %v366_v1, %v358_v5  ;;  %v667_v5 = vsel %vm373_vm8, %v1549_v47, %v1545_v39  ;;  %v425_v39 = vsel %vm300_vm7, %v1551_v15, %v1553_v51 }
 0x1a7   :  { %v390_v36 = vmul.f32 %v1500_v18, %v374_v16  ;;  %v391_v44 = vmul.f32 %v1503_v63, %v378_v13  ;;  %v429_v47 = vsel %vm300_vm7, %v1553_v51, %v1551_v15  ;;  %v356_v63 = vadd.f32 %v348_v53, %v324_v22  ;;  %v1730_v15 = vld [vmem:[%s1826_s3 + $0x18] ss:$0 sm:$0xff] }
 0x1a8   :  { %v580_v45 = vpop.permute.xlu0 %579  ;;  %v514_v38 = vmul.f32 %v1536_v17, %v496_v60  ;;  %v515_v1 = vmul.f32 %v1539_v19, %v500_v61  ;;  %v404_v51 = vadd.f32 %v396_v21, %v355_v26 }
 0x1a9   :  { %v398_v50 = vadd.f32 %v390_v36, %v349_v57  ;;  %v399_v46 = vadd.f32 %v391_v44, %v350_v54  ;;  %v588_v48 = vpop.permute.xlu1 %587  ;;  %v405_v25 = vadd.f32 %v397_v33, %v356_v63  ;;  %v444_v57 = vmul.f32 %v1511_v7, %v429_v47  ;;  %v1840_v63 = vld [vmem:[#allocation4_spill] sm:$0xff] }
 0x1aa   :  { %v593_v29 = vsel %vm300_vm7, %v580_v45, %v588_v48  ;;  %v597_v23 = vsel %vm300_vm7, %v588_v48, %v580_v45  ;;  %v445_v54 = vmul.f32 %v1514_v34, %v425_v39  ;;  %v522_v22 = vadd.f32 %v514_v38, %v1605_v2  ;;  %v1838_v39 = vld [vmem:[#allocation3_spill] sm:$0xff] }
 0x1ab   :  { %v446_v20 = vadd.f32 %v438_v3, %v398_v50  ;;  %v447_v18 = vadd.f32 %v439_v12, %v399_v46  ;;  %v611_v13 = vmul.f32 %v1584_v11, %v597_v23  ;;  %v523_v45 = vadd.f32 %v515_v1, %v1607_v42 }
 0x1ac   :  { %v650_v27 = vpop.permute.xlu0 %649  ;;  %v680_v48 = vmul.f32 %v1730_v15, %v667_v5  ;;  %v452_v21 = vadd.f32 %v444_v57, %v404_v51  ;;  %v453_v34 = vadd.f32 %v445_v54, %v405_v25  ;;  %v636_v47 = vmul.f32 %v1581_v32, %v1838_v39 }
 0x1ad   :  { %v470_v62 = vadd.f32 %v1615_v40, %v446_v20  ;;  %v471_v0 = vadd.f32 %v463_v43, %v447_v18  ;;  %v658_v16 = vpop.permute.xlu1 %657  ;;  %v612_v40 = vmul.f32 %v1587_v56, %v593_v29  ;;  %v619_v60 = vadd.f32 %v611_v13, %v522_v22  ;;  %v1839_v20 = vld [vmem:[#allocation2_spill] sm:$0xff]  ;;  %v1841_v29 = vld [vmem:[#allocation5_spill] sm:$0xff] }
 0x1ae   :  { %v664_v53 = vsel %vm373_vm8, %v650_v27, %v658_v16  ;;  %v668_v3 = vsel %vm373_vm8, %v658_v16, %v650_v27  ;;  %v638_v23 = vmul.f32 %v1581_v32, %v1841_v29  ;;  %v973_v29 = vld [vmem:[%s1823_s0] sm:$0xff] }
 0x1af   :  { %v518_v12 = vadd.f32 %v510_v28, %v470_v62  ;;  %v682_v43 = vmul.f32 %v1730_v15, %v668_v3  ;;  %v681_v36 = vmul.f32 %v1685_v14, %v664_v53  ;;  %v519_v6 = vadd.f32 %v511_v31, %v471_v0 }
 0x1b0   :  { %v485_v44 = vpop.permute.xlu0 %484  ;;  %v620_v61 = vadd.f32 %v612_v40, %v523_v45  ;;  %v643_v1 = vadd.f32 %v1636_v59, %v619_v60 }
 0x1b1   :  { %v690_v28 = vadd.f32 %v682_v43, %v1611_v58  ;;  %v493_v50 = vpop.permute.xlu1 %492  ;;  %v615_v46 = vadd.f32 %v607_v41, %v518_v12  ;;  %v616_v33 = vadd.f32 %v608_v52, %v519_v6  ;;  %v689_v2 = vadd.f32 %v681_v36, %v1609_v8 }
 0x1b2   :  { %v497_v7 = vsel %vm373_vm8, %v485_v44, %v493_v50  ;;  %v501_v42 = vsel %vm373_vm8, %v493_v50, %v485_v44  ;;  %v469_v52 = vmul.f32 %v1529_v4, %v1839_v20  ;;  %v637_v8 = vmul.f32 %v1578_v37, %v1840_v63 }
 0x1b3   :  { %v639_v31 = vadd.f32 %v1622_v35, %v615_v46  ;;  %v516_v58 = vmul.f32 %v1536_v17, %v497_v7  ;;  %v640_v5 = vadd.f32 %v1626_v9, %v616_v33  ;;  %v710_v35 = vadd.f32 %v1658_v30, %v690_v28 }
 0x1b4   :  { %v582_v41 = vpop.permute.xlu0 %581  ;;  %v476_v17 = vadd.f32 %v1648_v55, %v452_v21  ;;  %v477_v9 = vadd.f32 %v469_v52, %v453_v34  ;;  %v517_v38 = vmul.f32 %v1539_v19, %v501_v42  ;;  %v709_v37 = vadd.f32 %v1651_v49, %v689_v2 }
 0x1b5   :  { %v660_v18 = vpop.permute.xlu1 %659  ;;  %v687_v26 = vadd.f32 %v679_v10, %v639_v31  ;;  %v688_v27 = vadd.f32 %v680_v48, %v640_v5  ;;  %v644_v10 = vadd.f32 %v636_v47, %v620_v61  ;;  %v718_v19 = vmax.f32 %v710_v35, 0.0 }
 0x1b6   :  { %v524_v62 = vadd.f32 %v516_v58, %v476_v17  ;;  %v525_v13 = vadd.f32 %v517_v38, %v477_v9  ;;  %v717_v22 = vmax.f32 %v709_v37, 0.0  ;;  %v975_v37 = vld [vmem:[%s1823_s0 + $0x10] sm:$0xff] }
 0x1b7   :  { %v707_v4 = vadd.f32 %v1651_v49, %v687_v26  ;;  %v708_v16 = vadd.f32 %v1658_v30, %v688_v27  ;;  %v726_v48 = vmin.f32 %v718_v19, 6.0  ;;  %v877_v26 = vld [vmem:[%s1828_s6] ss:$0 sm:$0xff] }
 0x1b8   :  { %v652_v0 = vpop.permute.xlu0 %651  ;;  %v725_v58 = vmin.f32 %v717_v22, 6.0 }
 0x1b9   :  { %v665_v32 = vsel %vm373_vm8, %v652_v0, %v660_v18  ;;  %v669_v55 = vsel %vm373_vm8, %v660_v18, %v652_v0  ;;  %v590_v51 = vpop.permute.xlu1 %589  ;;  %v715_v25 = vmax.f32 %v707_v4, 0.0  ;;  %v716_v57 = vmax.f32 %v708_v16, 0.0 }
 0x1ba   :  { %v683_v59 = vmul.f32 %v1685_v14, %v665_v32  ;;  %v684_v53 = vmul.f32 %v1730_v15, %v669_v55  ;;  %v594_v3 = vsel %vm300_vm7, %v582_v41, %v590_v51  ;;  %v598_v12 = vsel %vm300_vm7, %v590_v51, %v582_v41 }
 0x1bb   :  { %v613_v40 = vmul.f32 %v1584_v11, %v598_v12  ;;  %v614_v43 = vmul.f32 %v1587_v56, %v594_v3  ;;  %v723_v6 = vmin.f32 %v715_v25, 6.0  ;;  %v724_v46 = vmin.f32 %v716_v57, 6.0  ;;  %v976_v25 = vld [vmem:[%s1823_s0 + $0x18] sm:$0xff] }
 0x1bc   :  { %v691_v54 = vadd.f32 %v683_v59, %v643_v1  ;;  %v692_v36 = vadd.f32 %v684_v53, %v644_v10  ;;  %v654_v44 = vpop.permute.xlu0 %653  ;;  %v974_v1 = vld [vmem:[%s1823_s0 + $0x8] sm:$0xff] }
 0x1bd   :  { %v621_v45 = vadd.f32 %v613_v40, %v524_v62  ;;  %v622_v28 = vadd.f32 %v614_v43, %v525_v13  ;;  %v662_v50 = vpop.permute.xlu1 %661  ;;  %834 = vmatprep.mubr.f32.mxu1 %v724_v46 }
 0x1be   :  { %v666_v21 = vsel %vm373_vm8, %v654_v44, %v662_v50  ;;  %v670_v7 = vsel %vm373_vm8, %v662_v50, %v654_v44  ;;  %v712_v11 = vadd.f32 %v1658_v30, %v692_v36  ;;  %v711_v56 = vadd.f32 %v1651_v49, %v691_v54  ;;  %835 = vmatmul.mubr.f32.vlgmr.msra.gmra.mrb[0].mxu1 %v723_v6 }
 0x1bf   :  { %v645_v33 = vadd.f32 %v637_v8, %v621_v45  ;;  %v646_v34 = vadd.f32 %v638_v23, %v622_v28  ;;  %v685_v60 = vmul.f32 %v1685_v14, %v666_v21  ;;  %v686_v61 = vmul.f32 %v1730_v15, %v670_v7  ;;  %839 = vmatprep.mubr.f32.mxu1 %v726_v48 }
 0x1c0   :  { %v720_v31 = vmax.f32 %v712_v11, 0.0  ;;  %v719_v24 = vmax.f32 %v711_v56, 0.0 }
 0x1c1   :  { %v693_v2 = vadd.f32 %v685_v60, %v645_v33  ;;  %v694_v42 = vadd.f32 %v686_v61, %v646_v34 }
 0x1c2   :  { %v728_v41 = vmin.f32 %v720_v31, 6.0  ;;  %840 = vmatmul.mubr.f32.gmra.mrb[2].mxu1 %v725_v58  ;;  %v727_v14 = vmin.f32 %v719_v24, 6.0 }
 0x1c3   :  { %v714_v5 = vadd.f32 %v1658_v30, %v694_v42  ;;  %v713_v39 = vadd.f32 %v1651_v49, %v693_v2 }
 0x1c4   :  { %844 = vmatprep.mubr.f32.mxu1 %v728_v41 }
 0x1c5   :  { %v722_v47 = vmax.f32 %v714_v5, 0.0  ;;  %v721_v20 = vmax.f32 %v713_v39, 0.0 }
 0x1c6   :  { %845 = vmatmul.mubr.f32.gmra.mrb[4].mxu1 %v727_v14 }
 0x1c7   :  { %v730_v52 = vmin.f32 %v722_v47, 6.0  ;;  %v729_v15 = vmin.f32 %v721_v20, 6.0 }
 0x1c9   :  { %849 = vmatprep.mubr.f32.mxu1 %v730_v52 }
 0x1ca   :  { %850 = vmatmul.mubr.f32.gmra.mrb[6].mxu1 %v729_v15 }
 0x291   :  { %v910_v18 = vpop.f32.mrb[0].mxu1 }
 0x292   :  { %v911_v35 = vpop.f32.mrb[1].mxu1 }
 0x293   :  { %v912_v63 = vadd.f32 %v911_v35, %v910_v18 }
 0x295   :  { %v837_v30 = vadd.f32 %v912_v63, %v877_v26  ;;  %v913_v8 = vpop.f32.mrb[2].mxu1 }
 0x296   :  { %v914_v49 = vpop.f32.mrb[3].mxu1 }
 0x297   :  { %v855_v23 = vadd.f32 %v973_v29, %v837_v30  ;;  %v915_v17 = vadd.f32 %v914_v49, %v913_v8 }
 0x299   :  { %859 = vst.msk [vmem:[%s1829_s7] sm:$0xff] %vm58_vm0, %v855_v23  ;;  %v842_v27 = vadd.f32 %v915_v17, %v877_v26  ;;  %v916_v9 = vpop.f32.mrb[4].mxu1 }
 0x29a   :  { %v917_v38 = vpop.f32.mrb[5].mxu1 }
 0x29b   :  { %v856_v4 = vadd.f32 %v974_v1, %v842_v27  ;;  %v918_v62 = vadd.f32 %v917_v38, %v916_v9 }
 0x29d   :  { %860 = vst.msk [vmem:[%s1829_s7 + $0x8] sm:$0xff] %vm58_vm0, %v856_v4  ;;  %v847_v10 = vadd.f32 %v918_v62, %v877_v26  ;;  %v919_v0 = vpop.f32.mrb[6].mxu1 }
 0x29e   :  { %v920_v16 = vpop.f32.mrb[7].mxu1 }
 0x29f   :  { %v857_v32 = vadd.f32 %v975_v37, %v847_v10  ;;  %v921_v55 = vadd.f32 %v920_v16, %v919_v0 }
 0x2a1   :  { %861 = vst.msk [vmem:[%s1829_s7 + $0x10] sm:$0xff] %vm58_vm0, %v857_v32  ;;  %v852_v51 = vadd.f32 %v921_v55, %v877_v26 }
 0x2a3   :  { %v858_v19 = vadd.f32 %v976_v25, %v852_v51 }
 0x2a5   :  { %862 = vst.msk [vmem:[%s1829_s7 + $0x18] sm:$0xff] %vm58_vm0, %v858_v19 }

</bundles_post_ra>
